<compile_context>
chip_gen: v7x
topology: tpu7x:2x2x1
jax: 0.10.0
libtpu: 0.0.40
codegen_flags: <defaults>
</compile_context>

<pallas_src>
import jax
import jax.numpy as jnp
from jax.experimental import pallas as pl
from jax.experimental.pallas import tpu as pltpu


def _round_up(x, m):
    return ((x + m - 1) // m) * m


def _vmem_limit(need_bytes):
    """Explicit scoped-VMEM limit: working set + headroom, >=32 MiB, <=112 MiB."""
    return int(min(max(need_bytes + (8 << 20), 32 << 20), 112 << 20))


# --------------------------- Pallas aggregation kernels -----------------------

def _agg_fused_layer1_kernel(a_ref, y_ref, b1_ref, w2_ref, out_ref, acc_ref):
    """Layer 1 (fused):  out = relu(A_hat @ Y + b1) @ W2   (bf16 output).

    a_ref   : (TM, TK)        bf16 tile of the normalized adjacency
    y_ref   : (N_pad, Hp)     bf16 resident operand (X @ W1)
    b1_ref  : (1, Hp)         f32 bias, resident
    w2_ref  : (Hp, Cp)        bf16 second-layer weight, resident
    out_ref : (TM, Cp)        bf16 fused output tile (H @ W2)
    acc_ref : (TM, Hp)        f32 accumulator across the K axis
    """
    k = pl.program_id(1)
    tk = a_ref.shape[1]
    start = pl.multiple_of(k * tk, 128)
    p = jnp.dot(a_ref[...], y_ref[pl.ds(start, tk), :],
                preferred_element_type=jnp.float32)

    @pl.when(k == 0)
    def _():
        acc_ref[...] = p            # first K step assigns (no zero-fill pass)

    @pl.when(k > 0)
    def _():
        acc_ref[...] += p

    @pl.when(k == pl.num_programs(1) - 1)
    def _():
        h = jnp.maximum(acc_ref[...] + b1_ref[...], 0.0).astype(jnp.bfloat16)
        out_ref[...] = jnp.dot(
            h, w2_ref[...], preferred_element_type=jnp.float32
        ).astype(out_ref.dtype)


def _agg_layer2_kernel(a_ref, y_ref, b_ref, out_ref):
    """Layer 2:  out = A_hat @ Y + b   (f32), accumulated directly in out_ref.

    a_ref   : (TM, TK)        bf16 adjacency tile
    y_ref   : (N_pad, Cp)     bf16 resident operand (H @ W2)
    b_ref   : (1, Cp)         f32 bias, resident
    out_ref : (TM, Cp)        f32 output tile, resident across the K axis
    """
    k = pl.program_id(1)
    tk = a_ref.shape[1]
    start = pl.multiple_of(k * tk, 128)
    p = jnp.dot(a_ref[...], y_ref[pl.ds(start, tk), :],
                preferred_element_type=jnp.float32)

    @pl.when(k == 0)
    def _():
        out_ref[...] = p

    @pl.when(k > 0)
    def _():
        out_ref[...] += p

    @pl.when(k == pl.num_programs(1) - 1)
    def _():
        out_ref[...] += b_ref[...]


# ------------------------------ pallas_call wrappers ---------------------------

def aggregate_fused_layer1(a_bf, y_bf, b1_f32, w2_bf, *, tm, tk):
    """bf16 HW2 = relu(A_hat @ Y + b1) @ W2, tiled over (row tiles, K tiles)."""
    n_pad = a_bf.shape[0]
    h_pad = y_bf.shape[1]
    c_pad = w2_bf.shape[1]
    grid = (n_pad // tm, n_pad // tk)

    flops = 2 * n_pad * n_pad * h_pad + 2 * n_pad * h_pad * c_pad
    bytes_accessed = (n_pad * n_pad * 2        # A_hat (bf16), read once
                      + n_pad * h_pad * 2      # Y resident, read once
                      + n_pad * c_pad * 2      # fused bf16 output
                      + h_pad * c_pad * 2      # W2
                      + h_pad * 4)             # bias

    need = (2 * tm * tk * 2                    # A tile, double-buffered
            + 2 * n_pad * h_pad * 2            # resident Y (conservative x2)
            + 2 * tm * c_pad * 2               # out tile, double-buffered
            + tm * h_pad * 4                   # f32 accumulator
            + 2 * h_pad * c_pad * 2            # W2 (x2)
            + 2 * h_pad * 4)                   # bias (x2)

    return pl.pallas_call(
        _agg_fused_layer1_kernel,
        out_shape=jax.ShapeDtypeStruct((n_pad, c_pad), jnp.bfloat16),
        grid_spec=pltpu.PrefetchScalarGridSpec(
            num_scalar_prefetch=0,
            grid=grid,
            in_specs=[
                pl.BlockSpec((tm, tk), lambda i, k: (i, k)),        # A row/K tile
                pl.BlockSpec((n_pad, h_pad), lambda i, k: (0, 0)),  # Y resident
                pl.BlockSpec((1, h_pad), lambda i, k: (0, 0)),      # b1 resident
                pl.BlockSpec((h_pad, c_pad), lambda i, k: (0, 0)),  # W2 resident
            ],
            out_specs=pl.BlockSpec((tm, c_pad), lambda i, k: (i, 0)),
            scratch_shapes=[pltpu.VMEM((tm, h_pad), jnp.float32)],
        ),
        compiler_params=pltpu.CompilerParams(
            dimension_semantics=("parallel", "arbitrary"),
            vmem_limit_bytes=_vmem_limit(need)),
        cost_estimate=pl.CostEstimate(
            flops=flops, transcendentals=0, bytes_accessed=bytes_accessed),
    )(a_bf, y_bf, b1_f32, w2_bf)


def aggregate_layer2(a_bf, y_bf, b_f32, *, tm, tk):
    """f32 out = A_hat @ Y + b, tiled over (row tiles, K tiles)."""
    n_pad = a_bf.shape[0]
    c_pad = y_bf.shape[1]
    grid = (n_pad // tm, n_pad // tk)

    flops = 2 * n_pad * n_pad * c_pad
    bytes_accessed = (n_pad * n_pad * 2        # A_hat (bf16), read once
                      + n_pad * c_pad * 2      # Y resident, read once
                      + n_pad * c_pad * 4      # f32 output
                      + c_pad * 4)             # bias

    need = (2 * tm * tk * 2                    # A tile, double-buffered
            + 2 * n_pad * c_pad * 2            # resident Y (conservative x2)
            + 2 * tm * c_pad * 4               # f32 out tile, double-buffered
            + 2 * c_pad * 4)                   # bias (x2)

    return pl.pallas_call(
        _agg_layer2_kernel,
        out_shape=jax.ShapeDtypeStruct((n_pad, c_pad), jnp.float32),
        grid_spec=pltpu.PrefetchScalarGridSpec(
            num_scalar_prefetch=0,
            grid=grid,
            in_specs=[
                pl.BlockSpec((tm, tk), lambda i, k: (i, k)),        # A row/K tile
                pl.BlockSpec((n_pad, c_pad), lambda i, k: (0, 0)),  # Y resident
                pl.BlockSpec((1, c_pad), lambda i, k: (0, 0)),      # bias resident
            ],
            out_specs=pl.BlockSpec((tm, c_pad), lambda i, k: (i, 0)),
            scratch_shapes=[],
        ),
        compiler_params=pltpu.CompilerParams(
            dimension_semantics=("parallel", "arbitrary"),
            vmem_limit_bytes=_vmem_limit(need)),
        cost_estimate=pl.CostEstimate(
            flops=flops, transcendentals=0, bytes_accessed=bytes_accessed),
    )(a_bf, y_bf, b_f32)


# ------------------------------ model forward --------------------------------

def _choose_tiles(n):
    """Return (n_pad, tm, tk).

    * >= 2 row tiles whenever n_pad >= 256 so the 'parallel' row axis feeds
      both v7x TensorCores.
    * Large graphs: tm = tk = 1024 (A tile double-buffered = 4 MiB, fits every
      generation including v7x's 64 MiB VMEM with the resident-Y buffers).
    """
    n_pad = _round_up(n, 128)
    if n_pad <= 128:
        return 128, 128, 128
    if n_pad <= 2048:
        n_pad = _round_up(n, 256)
        return n_pad, n_pad // 2, n_pad       # 2 row tiles, single K step
    n_pad = _round_up(n, 1024)
    return n_pad, 1024, 1024


def gcn_model_forward(a_hat, x, w1, b1, w2, b2, *, tm=None, tk=None):
    """Two-layer GCN forward: out = A_hat @ (relu(A_hat @ (X W1) + b1) W2) + b2."""
    n = x.shape[0]
    hid = w1.shape[1]
    c_out = w2.shape[1]

    if tm is None and tk is None:
        n_pad, tm, tk = _choose_tiles(n)
    else:
        assert tm is not None and tk is not None
        n_pad = _round_up(_round_up(n, tm), tk)
    assert n_pad % tm == 0 and n_pad % tk == 0
    assert tm % 8 == 0 and tk % 128 == 0

    # lane-dense channel padding (zero padding is numerically exact)
    h_pad = _round_up(hid, 128)
    c_pad = _round_up(c_out, 128)

    # adjacency: cast to bf16 FIRST, then zero-pad (no padded f32 intermediate)
    a_bf = jnp.zeros((n_pad, n_pad), jnp.bfloat16).at[:n, :n].set(
        a_hat.astype(jnp.bfloat16))

    x_p = jnp.zeros((n_pad, x.shape[1]), jnp.float32).at[:n, :].set(x)
    w1_p = jnp.zeros((w1.shape[0], h_pad), jnp.float32).at[:, :hid].set(w1)
    b1_p = jnp.zeros((1, h_pad), jnp.float32).at[0, :hid].set(b1)
    w2_p = jnp.zeros((h_pad, c_pad), jnp.bfloat16).at[:hid, :c_out].set(
        w2.astype(jnp.bfloat16))
    b2_p = jnp.zeros((1, c_pad), jnp.float32).at[0, :c_out].set(b2)

    # tiny feature transform hoisted to XLA (negligible FLOPs vs aggregation)
    xw1_bf = (x_p @ w1_p).astype(jnp.bfloat16)                      # (Np, Hp)

    # layer 1 (fused): HW2 = relu(A_hat @ XW1 + b1) @ W2   -> bf16, no HBM H
    hw2_bf = aggregate_fused_layer1(a_bf, xw1_bf, b1_p, w2_p, tm=tm, tk=tk)

    # layer 2: out = A_hat @ HW2 + b2
    out_p = aggregate_layer2(a_bf, hw2_bf, b2_p, tm=tm, tk=tk)

    return out_p[:n, :c_out]


# ------------------------------ plain-JAX glue --------------------------------

def build_normalized_adjacency(edge_index, num_nodes):
    """Dense D^{-1/2}(A + I)D^{-1/2}, matching torch_geometric.gcn_norm."""
    row, col = edge_index[0], edge_index[1]
    loop = jnp.arange(num_nodes, dtype=edge_index.dtype)
    row = jnp.concatenate([row, loop])
    col = jnp.concatenate([col, loop])
    w = jnp.ones(row.shape[0], dtype=jnp.float32)

    deg = jnp.zeros((num_nodes,), jnp.float32).at[col].add(w)
    deg_inv_sqrt = jnp.where(deg > 0, jax.lax.rsqrt(deg), 0.0)
    norm = deg_inv_sqrt[row] * w * deg_inv_sqrt[col]

    # message from source `row` aggregated at target `col`:
    # out[i] = sum_j A_hat[i, j] * x[j]
    a_hat = jnp.zeros((num_nodes, num_nodes), jnp.float32).at[col, row].add(norm)
    return a_hat


def matched_reference(a_hat, x, w1, b1, w2, b2):
    """Mirror of the kernel's bf16-operand / f32-accumulate math (unpadded)."""
    a_bf = a_hat.astype(jnp.bfloat16)
    xw1 = (x @ w1).astype(jnp.bfloat16)
    h = jnp.maximum(
        jnp.dot(a_bf, xw1, preferred_element_type=jnp.float32) + b1, 0.0)
    hw2 = jnp.dot(h.astype(jnp.bfloat16), w2.astype(jnp.bfloat16),
                  preferred_element_type=jnp.float32).astype(jnp.bfloat16)
    return jnp.dot(a_bf, hw2, preferred_element_type=jnp.float32) + b2


def glorot(key, shape):
    fan_in, fan_out = shape
    limit = jnp.sqrt(6.0 / (fan_in + fan_out))
    return jax.random.uniform(key, shape, jnp.float32, -limit, limit)


# ---------------------------------- main --------------------------------------

if __name__ == "__main__":
    key = jax.random.PRNGKey(0)
    k_x, k_e, k_w1, k_w2, k_b1, k_b2, k_x2, k_e2 = jax.random.split(key, 8)

    in_channels, hidden_channels, out_channels = 4, 32, 8

    # deterministic parameters (GCNConv: weight (Cin, Cout) + bias (Cout,))
    w1 = glorot(k_w1, (in_channels, hidden_channels))
    b1 = 0.1 * jax.random.normal(k_b1, (hidden_channels,), jnp.float32)
    w2 = glorot(k_w2, (hidden_channels, out_channels))
    b2 = 0.1 * jax.random.normal(k_b2, (out_channels,), jnp.float32)

    def run_case(kx, ke, num_nodes, num_edges, tm=None, tk=None):
        x = jax.random.normal(kx, (num_nodes, in_channels), jnp.float32)
        edge_index = jax.random.randint(
            ke, (2, num_edges), 0, num_nodes, dtype=jnp.int32)
        a_hat = build_normalized_adjacency(edge_index, num_nodes)

        out = gcn_model_forward(a_hat, x, w1, b1, w2, b2, tm=tm, tk=tk)
        out = jax.block_until_ready(out)
        assert out.shape == (num_nodes, out_channels)

        # (a) matched-precision reference (bf16 operands, f32 accumulation)
        out_m = matched_reference(a_hat, x, w1, b1, w2, b2)
        assert jnp.allclose(out, out_m, atol=1e-2, rtol=1e-2), (
            f"matched-precision mismatch (N={num_nodes})")

        # (b) pure-f32 semantic reference (loose tol: bf16 adjacency in kernel)
        h_ref = jnp.maximum(a_hat @ (x @ w1) + b1, 0.0)
        out_ref = a_hat @ (h_ref @ w2) + b2
        assert jnp.allclose(out, out_ref, atol=5e-2, rtol=5e-2), (
            f"f32 semantic mismatch (N={num_nodes})")

    # small graph, auto tiling (single-tile fast path)
    run_case(k_x, k_e, num_nodes=16, num_edges=40)

    # larger graph with forced small tiles: exercises row tiling, zero-padding
    # of a non-multiple N, AND the K-reduction accumulation path (grid (3, 3)).
    run_case(k_x2, k_e2, num_nodes=300, num_edges=1200, tm=128, tk=128)

    print("KERNEL_OK")
</pallas_src>

<mosaic_0001>
module attributes {stable_mosaic.version = 11 : i64} {
  func.func @_agg_fused_layer1_kernel(%arg0: i32, %arg1: i32, %arg2: memref<128x128xbf16, #tpu.memory_space<vmem>>, %arg3: memref<128x128xbf16, #tpu.memory_space<vmem>>, %arg4: memref<1x128xf32, #tpu.memory_space<vmem>>, %arg5: memref<128x128xbf16, #tpu.memory_space<vmem>>, %arg6: memref<128x128xbf16, #tpu.memory_space<vmem>>, %arg7: memref<128x128xf32, #tpu.memory_space<vmem>>) attributes {dimension_semantics = [#tpu.dimension_semantics<parallel>, #tpu.dimension_semantics<arbitrary>], iteration_bounds = array<i64: 1, 1>, scalar_prefetch = 0 : i64, scratch_operands = 1 : i64, tpu.core_type = #tpu.core_type<tc>, window_params = [{transform_indices = @transform_0, window_bounds = array<i64: 128, 128>}, {pipeline_mode = #tpu.pipeline_mode<synchronous>, transform_indices = @transform_1, window_bounds = array<i64: 128, 128>}, {pipeline_mode = #tpu.pipeline_mode<synchronous>, transform_indices = @transform_2, window_bounds = array<i64: 1, 128>}, {pipeline_mode = #tpu.pipeline_mode<synchronous>, transform_indices = @transform_3, window_bounds = array<i64: 128, 128>}, {transform_indices = @transform_4, window_bounds = array<i64: 128, 128>}]} {
    %c128_i32 = arith.constant 128 : i32
    %0 = arith.muli %arg1, %c128_i32 : i32
    %1 = tpu.assume_multiple %0, 128 : i32
    %c0 = arith.constant 0 : index
    %c0_0 = arith.constant 0 : index
    %2 = vector.load %arg2[%c0, %c0_0] : memref<128x128xbf16, #tpu.memory_space<vmem>>, vector<128x128xbf16>
    %3 = arith.index_cast %1 : i32 to index
    %c0_1 = arith.constant 0 : index
    %4 = vector.load %arg3[%3, %c0_1] : memref<128x128xbf16, #tpu.memory_space<vmem>>, vector<128x128xbf16>
    %cst = arith.constant dense<0.000000e+00> : vector<128x128xf32>
    %5 = tpu.matmul %2, %4, %cst {dimension_numbers = #tpu.dot_dimension_numbers<[1], [0], [0], [1], [0, 0, 1, 1], [], []>} : vector<128x128xbf16>, vector<128x128xbf16>, vector<128x128xf32> -> vector<128x128xf32>
    %c0_i32 = arith.constant 0 : i32
    %6 = arith.cmpi eq, %arg1, %c0_i32 : i32
    %7 = arith.extui %6 : i1 to i32
    %c0_i32_2 = arith.constant 0 : i32
    %8 = arith.cmpi ne, %7, %c0_i32_2 : i32
    scf.if %8 {
      %c0_7 = arith.constant 0 : index
      %c0_8 = arith.constant 0 : index
      %15 = vector.load %arg7[%c0_7, %c0_8] : memref<128x128xf32, #tpu.memory_space<vmem>>, vector<128x128xf32>
      tpu.vector_store %arg7[%c0_7, %c0_8], %5 {strides = array<i32>} : memref<128x128xf32, #tpu.memory_space<vmem>>, vector<128x128xf32>,
    } else {
    }
    %c0_i32_3 = arith.constant 0 : i32
    %9 = arith.cmpi sgt, %arg1, %c0_i32_3 : i32
    %10 = arith.extui %9 : i1 to i32
    %c0_i32_4 = arith.constant 0 : i32
    %11 = arith.cmpi ne, %10, %c0_i32_4 : i32
    scf.if %11 {
      %c0_7 = arith.constant 0 : index
      %c0_8 = arith.constant 0 : index
      %15 = vector.load %arg7[%c0_7, %c0_8] : memref<128x128xf32, #tpu.memory_space<vmem>>, vector<128x128xf32>
      %16 = arith.addf %15, %5 : vector<128x128xf32>
      %c0_9 = arith.constant 0 : index
      %c0_10 = arith.constant 0 : index
      %17 = vector.load %arg7[%c0_9, %c0_10] : memref<128x128xf32, #tpu.memory_space<vmem>>, vector<128x128xf32>
      tpu.vector_store %arg7[%c0_9, %c0_10], %16 {strides = array<i32>} : memref<128x128xf32, #tpu.memory_space<vmem>>, vector<128x128xf32>,
    } else {
    }
    %c0_i32_5 = arith.constant 0 : i32
    %12 = arith.cmpi eq, %arg1, %c0_i32_5 : i32
    %13 = arith.extui %12 : i1 to i32
    %c0_i32_6 = arith.constant 0 : i32
    %14 = arith.cmpi ne, %13, %c0_i32_6 : i32
    scf.if %14 {
      %c0_7 = arith.constant 0 : index
      %c0_8 = arith.constant 0 : index
      %15 = vector.load %arg7[%c0_7, %c0_8] : memref<128x128xf32, #tpu.memory_space<vmem>>, vector<128x128xf32>
      %c0_9 = arith.constant 0 : index
      %c0_10 = arith.constant 0 : index
      %16 = vector.load %arg4[%c0_9, %c0_10] : memref<1x128xf32, #tpu.memory_space<vmem>>, vector<1x128xf32>
      %17 = vector.broadcast %16 : vector<1x128xf32> to vector<128x128xf32>
      %18 = arith.addf %15, %17 : vector<128x128xf32>
      %cst_11 = arith.constant 0.000000e+00 : f32
      %19 = vector.broadcast %cst_11 : f32 to vector<128x128xf32>
      %20 = arith.maximumf %18, %19 : vector<128x128xf32>
      %21 = arith.truncf %20 : vector<128x128xf32> to vector<128x128xbf16>
      %c0_12 = arith.constant 0 : index
      %c0_13 = arith.constant 0 : index
      %22 = vector.load %arg5[%c0_12, %c0_13] : memref<128x128xbf16, #tpu.memory_space<vmem>>, vector<128x128xbf16>
      %cst_14 = arith.constant dense<0.000000e+00> : vector<128x128xf32>
      %23 = tpu.matmul %21, %22, %cst_14 {dimension_numbers = #tpu.dot_dimension_numbers<[1], [0], [0], [1], [0, 0, 1, 1], [], []>} : vector<128x128xbf16>, vector<128x128xbf16>, vector<128x128xf32> -> vector<128x128xf32>
      %24 = arith.truncf %23 : vector<128x128xf32> to vector<128x128xbf16>
      %c0_15 = arith.constant 0 : index
      %c0_16 = arith.constant 0 : index
      %25 = vector.load %arg6[%c0_15, %c0_16] : memref<128x128xbf16, #tpu.memory_space<vmem>>, vector<128x128xbf16>
      tpu.vector_store %arg6[%c0_15, %c0_16], %24 {strides = array<i32>} : memref<128x128xbf16, #tpu.memory_space<vmem>>, vector<128x128xbf16>,
    } else {
    }
    return
  }
  func.func @transform_0(%arg0: i32, %arg1: i32) -> (i32, i32) {
    %c0_i32 = arith.constant 0 : i32
    return %arg0, %arg1 : i32, i32
  }
  func.func @transform_1(%arg0: i32, %arg1: i32) -> (i32, i32) {
    %c0_i32 = arith.constant 0 : i32
    %c0_i32_0 = arith.constant 0 : i32
    %c0_i32_1 = arith.constant 0 : i32
    return %c0_i32, %c0_i32_0 : i32, i32
  }
  func.func @transform_2(%arg0: i32, %arg1: i32) -> (i32, i32) {
    %c0_i32 = arith.constant 0 : i32
    %c0_i32_0 = arith.constant 0 : i32
    %c0_i32_1 = arith.constant 0 : i32
    return %c0_i32, %c0_i32_0 : i32, i32
  }
  func.func @transform_3(%arg0: i32, %arg1: i32) -> (i32, i32) {
    %c0_i32 = arith.constant 0 : i32
    %c0_i32_0 = arith.constant 0 : i32
    %c0_i32_1 = arith.constant 0 : i32
    return %c0_i32, %c0_i32_0 : i32, i32
  }
  func.func @transform_4(%arg0: i32, %arg1: i32) -> (i32, i32) {
    %c0_i32 = arith.constant 0 : i32
    %c0_i32_0 = arith.constant 0 : i32
    return %arg0, %c0_i32 : i32, i32
  }
}

</mosaic_0001>

<bundles_post_ra>
// kernel: tpu_custom_call.1
= control target key start
LH: loop header
LB: loop body
LE: loop exit
PB: predicated region body
PF: predicated region fallthrough
CT: control target
= control target key end

     0   :  { %9 = vsyncpa [#allocation4], 0  ;;  %s1114_s0 = inlined_call_operand.hbm [shape: bf16[128,128], index: 0, kind: input, shape index: {}]   ;;  %s1115_s1 = inlined_call_operand.hbm [shape: bf16[128,128], index: 1, kind: input, shape index: {}]   ;;  %s1116_s2 = inlined_call_operand.vmem [shape: f32[1,128], index: 2, kind: input, shape index: {}]   ;;  %s1117_s3 = inlined_call_operand.hbm [shape: bf16[128,128], index: 3, kind: input, shape index: {}]   ;;  %s1118_s4 = inlined_call_operand.hbm [shape: bf16[128,128], index: 4, kind: output, shape index: {}]  }
   0x1   :  { %10 = vsyncpa [#allocation7], 0 }
   0x2   :  { %11 = vsyncpa [#allocation5], 0  ;;  %s1013_s15 = smov [#allocation6]   ;;  %s1014_s17 = smov [#allocation3]  }
   0x3   :  { %s29_s16 = sshll.u32 %s1013_s15, 4  ;;  %s17_s18 = sshll.u32 %s1014_s17, 4  ;;  %s30_s16 = int_to_ptr.vmem [resolvable:$true] %s29_s16  ;;  %s1044_s18 = int_to_ptr.vmem [resolvable:$true] %s17_s18 }
   0x4   :  { %s919_s21 = scalar_lea.hbm %s1115_s1, 1024 }
   0x5   :  { %p920_p0 = scmp.ne.s32.totalorder %s1115_s1, %s919_s21  ;;  %p923_p1 = scmp.lt.u32.totalorder %s919_s21, %s1115_s1 }
   0x7   :  { %p925_p2 = pnand %p923_p1, %p920_p0 }
   0x9   :  { %928 = shalt.err (!%p925_p2)
}
   0xa   :  { %s929_s26 = scalar_lea.vmem %s30_s16, 1024  ;;  %p934_p4 = scmp.lt.s32.totalorder %s30_s16, %s30_s16 }
   0xb   :  { %p930_p3 = scmp.ne.s32.totalorder %s30_s16, %s929_s26  ;;  %p935_p5 = scmp.lt.s32.totalorder %s929_s26, %s929_s26 }
   0xd   :  { %p936_p6 = por %p935_p5, %p934_p4 }
   0xf   :  { %p937_p7 = pnand %p936_p6, %p930_p3 }
  0x11   :  { %940 = shalt.err (!%p937_p7)
}
  0x12   :  { %s1015_s27 = smov 64   ;;  %s1016_s28 = smov 4  }
  0x13   :  { %35 = dma.hbm_to_vmem [thread:$0]  %s1115_s1, 1024, %s30_s16, [#allocation7], %s1015_s27, %s1015_s27, %s1016_s28  }
  0x14   :  { %s941_s7 = scalar_lea.hbm %s1114_s0, 1024 }
  0x15   :  { %p942_p8 = scmp.ne.s32.totalorder %s1114_s0, %s941_s7  ;;  %p945_p9 = scmp.lt.u32.totalorder %s941_s7, %s1114_s0 }
  0x17   :  { %p947_p10 = pnand %p945_p9, %p942_p8 }
  0x19   :  { %950 = shalt.err (!%p947_p10)
}
  0x1a   :  { %s951_s12 = scalar_lea.vmem %s1044_s18, 1024  ;;  %p956_p12 = scmp.lt.s32.totalorder %s1044_s18, %s1044_s18 }
  0x1b   :  { %p952_p11 = scmp.ne.s32.totalorder %s1044_s18, %s951_s12  ;;  %p957_p13 = scmp.lt.s32.totalorder %s951_s12, %s951_s12 }
  0x1d   :  { %p958_p0 = por %p957_p13, %p956_p12 }
  0x1f   :  { %p959_p1 = pnand %p958_p0, %p952_p11 }
  0x21   :  { %962 = shalt.err (!%p959_p1)
}
  0x22   :  { %23 = dma.hbm_to_vmem [thread:$0]  %s1114_s0, 1024, %s1044_s18, [#allocation4], %s1015_s27, %s1015_s27, %s1016_s28  }
  0x23   :  { %s1017_s14 = smov [#allocation8]   ;;  %s963_s19 = scalar_lea.hbm %s1117_s3, 1024 }
  0x24   :  { %s43_s15 = sshll.u32 %s1017_s14, 4  ;;  %p964_p2 = scmp.ne.s32.totalorder %s1117_s3, %s963_s19  ;;  %s44_s15 = int_to_ptr.vmem [resolvable:$true] %s43_s15 }
  0x25   :  { %p967_p3 = scmp.lt.u32.totalorder %s963_s19, %s1117_s3 }
  0x27   :  { %p969_p4 = pnand %p967_p3, %p964_p2 }
  0x29   :  { %972 = shalt.err (!%p969_p4)
}
  0x2a   :  { %s973_s24 = scalar_lea.vmem %s44_s15, 1024  ;;  %p978_p6 = scmp.lt.s32.totalorder %s44_s15, %s44_s15 }
  0x2b   :  { %p974_p5 = scmp.ne.s32.totalorder %s44_s15, %s973_s24  ;;  %p979_p7 = scmp.lt.s32.totalorder %s973_s24, %s973_s24 }
  0x2d   :  { %p980_p8 = por %p979_p7, %p978_p6 }
  0x2f   :  { %p981_p9 = pnand %p980_p8, %p974_p5 }
  0x31   :  { %984 = shalt.err (!%p981_p9)
}
  0x32   :  { %49 = dma.hbm_to_vmem [thread:$0]  %s1117_s3, 1024, %s44_s15, [#allocation7], %s1015_s27, %s1015_s27, %s1016_s28  }
  0x33   :  { %1007 = dma.done.wait [#allocation4], 1024  }
  0x34   :  { %1008 = vsyncadd [#allocation4], 4294966272 }
  0x35   :  { %1009 = dma.done.wait [#allocation7], 2048  }
  0x36   :  { %1010 = vsyncadd [#allocation7], 4294965248  ;;  %v895_v0 = vld [vmem:[#allocation6] sm:$0xff]   ;;  %v896_v1 = vld [vmem:[#allocation6 + $0x8] sm:$0xff]  }
  0x37   :  { %825 = vmatprep.subr.bf16.mxu0 %v895_v0  ;;  %v897_v2 = vld [vmem:[#allocation6 + $0x10] sm:$0xff]   ;;  %v898_v3 = vld [vmem:[#allocation6 + $0x18] sm:$0xff]   ;;  %v903_v4 = vld [vmem:[#allocation3] sm:$0xff]  }
  0x38   :  { %826 = vmatpush3.bf16.msra.mxu0 %v895_v0  ;;  %841 = vmatprep.mubr.bf16.mxu0 %v903_v4  ;;  %v899_v5 = vld [vmem:[#allocation6 + $0x20] sm:$0xff]   ;;  %v900_v6 = vld [vmem:[#allocation6 + $0x28] sm:$0xff]   ;;  %v901_v9 = vld [vmem:[#allocation6 + $0x30] sm:$0xff]  }
  0x39   :  { %827 = vmatprep.subr.bf16.mxu0 %v896_v1  ;;  %v911_v7 = vld [vmem:[#allocation8] sm:$0xff]   ;;  %v912_v8 = vld [vmem:[#allocation8 + $0x8] sm:$0xff]   ;;  %v913_v10 = vld [vmem:[#allocation8 + $0x10] sm:$0xff]  }
  0x3a   :  { %857 = vmatprep.subr.bf16.mxu1 %v911_v7  ;;  %v902_v11 = vld [vmem:[#allocation6 + $0x38] sm:$0xff]   ;;  %v915_v13 = vld [vmem:[#allocation8 + $0x20] sm:$0xff]   ;;  %v904_v14 = vld [vmem:[#allocation3 + $0x8] sm:$0xff]  }
  0x3b   :  { %858 = vmatpush3.bf16.msra.mxu1 %v911_v7  ;;  %v914_v12 = vld [vmem:[#allocation8 + $0x18] sm:$0xff]   ;;  %v905_v15 = vld [vmem:[#allocation3 + $0x10] sm:$0xff]   ;;  %v916_v16 = vld [vmem:[#allocation8 + $0x28] sm:$0xff]  }
  0x3c   :  { %828 = vmatpush3.bf16.msra.mxu0 %v896_v1  ;;  %859 = vmatprep.subr.bf16.mxu1 %v912_v8  ;;  %v906_v17 = vld [vmem:[#allocation3 + $0x18] sm:$0xff]   ;;  %v907_v18 = vld [vmem:[#allocation3 + $0x20] sm:$0xff]   ;;  %v908_v19 = vld [vmem:[#allocation3 + $0x28] sm:$0xff]  }
  0x3d   :  { %829 = vmatprep.subr.bf16.mxu0 %v897_v2  ;;  %v909_v20 = vld [vmem:[#allocation3 + $0x30] sm:$0xff]   ;;  %v910_v21 = vld [vmem:[#allocation3 + $0x38] sm:$0xff]   ;;  %v705_v24 = vld [vmem:[%s1116_s2] ss:$0 sm:$0xff]  ;;  %s1018_s2 = smov [#allocation9]  }
  0x3e   :  { %v917_v22 = vld [vmem:[#allocation8 + $0x30] sm:$0xff]   ;;  %v918_v23 = vld [vmem:[#allocation8 + $0x38] sm:$0xff]   ;;  %s674_s26 = sshll.u32 %s1018_s2, 4  ;;  %s675_s26 = int_to_ptr.vmem [resolvable:$true] %s674_s26 }
  0x3f   :  { %860 = vmatpush3.bf16.msra.mxu1 %v912_v8  ;;  %s985_s29 = scalar_lea.vmem %s675_s26, 1024  ;;  %p990_p11 = scmp.lt.s32.totalorder %s675_s26, %s675_s26 }
  0x40   :  { %830 = vmatpush3.bf16.msra.mxu0 %v897_v2  ;;  %861 = vmatprep.subr.bf16.mxu1 %v913_v10  ;;  %p986_p10 = scmp.ne.s32.totalorder %s675_s26, %s985_s29  ;;  %p991_p12 = scmp.lt.s32.totalorder %s985_s29, %s985_s29 }
  0x41   :  { %831 = vmatprep.subr.bf16.mxu0 %v898_v3 }
  0x42   :  { %p992_p13 = por %p991_p12, %p990_p11 }
  0x43   :  { %862 = vmatpush3.bf16.msra.mxu1 %v913_v10 }
  0x44   :  { %832 = vmatpush3.bf16.msra.mxu0 %v898_v3  ;;  %863 = vmatprep.subr.bf16.mxu1 %v914_v12  ;;  %p993_p0 = pnand %p992_p13, %p986_p10 }
  0x45   :  { %833 = vmatprep.subr.bf16.mxu0 %v899_v5 }
  0x47   :  { %864 = vmatpush3.bf16.msra.mxu1 %v914_v12 }
  0x48   :  { %834 = vmatpush3.bf16.msra.mxu0 %v899_v5  ;;  %865 = vmatprep.subr.bf16.mxu1 %v915_v13 }
  0x49   :  { %835 = vmatprep.subr.bf16.mxu0 %v900_v6 }
  0x4b   :  { %866 = vmatpush3.bf16.msra.mxu1 %v915_v13 }
  0x4c   :  { %836 = vmatpush3.bf16.msra.mxu0 %v900_v6  ;;  %867 = vmatprep.subr.bf16.mxu1 %v916_v16 }
  0x4d   :  { %837 = vmatprep.subr.bf16.mxu0 %v901_v9 }
  0x4f   :  { %868 = vmatpush3.bf16.msra.mxu1 %v916_v16 }
  0x50   :  { %838 = vmatpush3.bf16.msra.mxu0 %v901_v9  ;;  %869 = vmatprep.subr.bf16.mxu1 %v917_v22 }
  0x51   :  { %839 = vmatprep.subr.bf16.mxu0 %v902_v11 }
  0x53   :  { %870 = vmatpush3.bf16.msra.mxu1 %v917_v22 }
  0x54   :  { %840 = vmatpush3.bf16.msra.mxu0 %v902_v11  ;;  %871 = vmatprep.subr.bf16.mxu1 %v918_v23 }
  0x57   :  { %842 = vmatmul.mubr.bf16.vlgmr.msra.gmra.mrb[0].mxu0 %v904_v14  ;;  %872 = vmatpush3.bf16.msra.mxu1 %v918_v23 }
  0x58   :  { %845 = vmatprep.mubr.bf16.mxu0 %v905_v15 }
  0x5f   :  { %846 = vmatmul.mubr.bf16.gmra.mrb[4].mxu0 %v906_v17 }
  0x60   :  { %849 = vmatprep.mubr.bf16.mxu0 %v907_v18 }
  0x67   :  { %850 = vmatmul.mubr.bf16.gmra.mrb[8].mxu0 %v908_v19 }
  0x68   :  { %853 = vmatprep.mubr.bf16.mxu0 %v909_v20 }
  0x6f   :  { %854 = vmatmul.mubr.bf16.gmra.mrb[12].mxu0 %v910_v21 }
 0x12a   :  { %v843_v25 = vpop.f32.mrb[0].mxu0 }
 0x12b   :  { %v390_v26 = vadd.f32 %v843_v25, %v705_v24  ;;  %v227_v27 = vpop.f32.mrb[1].mxu0 }
 0x12c   :  { %v388_v28 = vadd.f32 %v705_v24, %v227_v27  ;;  %v844_v29 = vpop.f32.mrb[2].mxu0 }
 0x12d   :  { %v391_v30 = vadd.f32 %v844_v29, %v705_v24  ;;  %v230_v31 = vpop.f32.mrb[3].mxu0  ;;  %v406_v33 = vmax.f32 %v390_v26, 0.0 }
 0x12e   :  { %v389_v32 = vadd.f32 %v705_v24, %v230_v31  ;;  %v404_v35 = vmax.f32 %v388_v28, 0.0 }
 0x12f   :  { %v407_v34 = vmax.f32 %v391_v30, 0.0 }
 0x130   :  { %v405_v36 = vmax.f32 %v389_v32, 0.0 }
 0x131   :  { %v421_v37 = vpack.c.bf16 %v407_v34, %v406_v33 }
 0x132   :  { %v847_v38 = vpop.f32.mrb[4].mxu0  ;;  %v420_v39 = vpack.c.bf16 %v405_v36, %v404_v35 }
 0x133   :  { %v394_v40 = vadd.f32 %v847_v38, %v705_v24  ;;  %v243_v41 = vpop.f32.mrb[5].mxu0 }
 0x134   :  { %v392_v42 = vadd.f32 %v705_v24, %v243_v41  ;;  %v848_v43 = vpop.f32.mrb[6].mxu0  ;;  %873 = vmatprep.mubr.bf16.mxu1 %v420_v39 }
 0x135   :  { %v395_v44 = vadd.f32 %v848_v43, %v705_v24  ;;  %v246_v45 = vpop.f32.mrb[7].mxu0  ;;  %874 = vmatmul.mubr.bf16.vlgmr.msra.gmra.mrb[0].mxu1 %v421_v37  ;;  %v410_v47 = vmax.f32 %v394_v40, 0.0 }
 0x136   :  { %v393_v46 = vadd.f32 %v705_v24, %v246_v45  ;;  %v408_v49 = vmax.f32 %v392_v42, 0.0 }
 0x137   :  { %v411_v48 = vmax.f32 %v395_v44, 0.0 }
 0x138   :  { %v409_v50 = vmax.f32 %v393_v46, 0.0 }
 0x139   :  { %v423_v51 = vpack.c.bf16 %v411_v48, %v410_v47 }
 0x13a   :  { %v422_v52 = vpack.c.bf16 %v409_v50, %v408_v49  ;;  %v851_v53 = vpop.f32.mrb[8].mxu0 }
 0x13b   :  { %v398_v54 = vadd.f32 %v851_v53, %v705_v24  ;;  %v259_v55 = vpop.f32.mrb[9].mxu0 }
 0x13c   :  { %v396_v56 = vadd.f32 %v705_v24, %v259_v55  ;;  %v852_v57 = vpop.f32.mrb[10].mxu0  ;;  %877 = vmatprep.mubr.bf16.mxu1 %v422_v52 }
 0x13d   :  { %v399_v58 = vadd.f32 %v852_v57, %v705_v24  ;;  %v262_v59 = vpop.f32.mrb[11].mxu0  ;;  %878 = vmatmul.mubr.bf16.gmra.mrb[4].mxu1 %v423_v51  ;;  %v414_v61 = vmax.f32 %v398_v54, 0.0 }
 0x13e   :  { %v397_v60 = vadd.f32 %v705_v24, %v262_v59  ;;  %v412_v63 = vmax.f32 %v396_v56, 0.0 }
 0x13f   :  { %v415_v62 = vmax.f32 %v399_v58, 0.0 }
 0x140   :  { %v413_v0 = vmax.f32 %v397_v60, 0.0 }
 0x141   :  { %v425_v1 = vpack.c.bf16 %v415_v62, %v414_v61 }
 0x142   :  { %v424_v2 = vpack.c.bf16 %v413_v0, %v412_v63  ;;  %v855_v3 = vpop.f32.mrb[12].mxu0 }
 0x143   :  { %v402_v4 = vadd.f32 %v855_v3, %v705_v24  ;;  %v275_v5 = vpop.f32.mrb[13].mxu0 }
 0x144   :  { %v400_v6 = vadd.f32 %v705_v24, %v275_v5  ;;  %v856_v7 = vpop.f32.mrb[14].mxu0  ;;  %881 = vmatprep.mubr.bf16.mxu1 %v424_v2 }
 0x145   :  { %v403_v8 = vadd.f32 %v856_v7, %v705_v24  ;;  %v278_v9 = vpop.f32.mrb[15].mxu0  ;;  %882 = vmatmul.mubr.bf16.gmra.mrb[8].mxu1 %v425_v1  ;;  %v418_v11 = vmax.f32 %v402_v4, 0.0 }
 0x146   :  { %v401_v10 = vadd.f32 %v705_v24, %v278_v9  ;;  %v416_v13 = vmax.f32 %v400_v6, 0.0 }
 0x147   :  { %v419_v12 = vmax.f32 %v403_v8, 0.0 }
 0x148   :  { %v417_v14 = vmax.f32 %v401_v10, 0.0 }
 0x149   :  { %v427_v15 = vpack.c.bf16 %v419_v12, %v418_v11 }
 0x14a   :  { %v426_v16 = vpack.c.bf16 %v417_v14, %v416_v13 }
 0x14c   :  { %885 = vmatprep.mubr.bf16.mxu1 %v426_v16 }
 0x14d   :  { %886 = vmatmul.mubr.bf16.gmra.mrb[12].mxu1 %v427_v15 }
 0x208   :  { %v875_v17 = vpop.f32.mrb[0].mxu1 }
 0x209   :  { %v526_v18 = vpop.f32.mrb[1].mxu1 }
 0x20a   :  { %v876_v19 = vpop.f32.mrb[2].mxu1 }
 0x20b   :  { %v754_v20 = vpack.c.bf16 %v876_v19, %v875_v17  ;;  %v529_v21 = vpop.f32.mrb[3].mxu1 }
 0x20c   :  { %v749_v22 = vpack.c.bf16 %v529_v21, %v526_v18 }
 0x20d   :  { %786 = vst [vmem:[#allocation9 + $0x8] sm:$0xff] %v754_v20  }
 0x20e   :  { %750 = vst [vmem:[#allocation9] sm:$0xff] %v749_v22  }
 0x210   :  { %v879_v23 = vpop.f32.mrb[4].mxu1 }
 0x211   :  { %v542_v25 = vpop.f32.mrb[5].mxu1 }
 0x212   :  { %v880_v26 = vpop.f32.mrb[6].mxu1 }
 0x213   :  { %v764_v24 = vpack.c.bf16 %v880_v26, %v879_v23  ;;  %v545_v27 = vpop.f32.mrb[7].mxu1 }
 0x214   :  { %v759_v28 = vpack.c.bf16 %v545_v27, %v542_v25 }
 0x215   :  { %788 = vst [vmem:[#allocation9 + $0x18] sm:$0xff] %v764_v24  }
 0x216   :  { %787 = vst [vmem:[#allocation9 + $0x10] sm:$0xff] %v759_v28  }
 0x218   :  { %v883_v29 = vpop.f32.mrb[8].mxu1 }
 0x219   :  { %v558_v30 = vpop.f32.mrb[9].mxu1 }
 0x21a   :  { %v884_v31 = vpop.f32.mrb[10].mxu1 }
 0x21b   :  { %v774_v32 = vpack.c.bf16 %v884_v31, %v883_v29  ;;  %v561_v33 = vpop.f32.mrb[11].mxu1 }
 0x21c   :  { %v769_v34 = vpack.c.bf16 %v561_v33, %v558_v30 }
 0x21d   :  { %790 = vst [vmem:[#allocation9 + $0x28] sm:$0xff] %v774_v32  }
 0x21e   :  { %789 = vst [vmem:[#allocation9 + $0x20] sm:$0xff] %v769_v34  }
 0x220   :  { %v887_v35 = vpop.f32.mrb[12].mxu1 }
 0x221   :  { %v574_v36 = vpop.f32.mrb[13].mxu1 }
 0x222   :  { %v888_v37 = vpop.f32.mrb[14].mxu1 }
 0x223   :  { %v784_v38 = vpack.c.bf16 %v888_v37, %v887_v35  ;;  %v577_v39 = vpop.f32.mrb[15].mxu1 }
 0x224   :  { %v779_v40 = vpack.c.bf16 %v577_v39, %v574_v36 }
 0x225   :  { %792 = vst [vmem:[#allocation9 + $0x38] sm:$0xff] %v784_v38  }
 0x226   :  { %791 = vst [vmem:[#allocation9 + $0x30] sm:$0xff] %v779_v40  }
 0x227   :  { %996 = shalt.err (!%p993_p0)
}
 0x228   :  { %s997_s6 = scalar_lea.hbm %s1118_s4, 1024 }
 0x229   :  { %p998_p1 = scmp.ne.s32.totalorder %s1118_s4, %s997_s6  ;;  %p1001_p2 = scmp.lt.u32.totalorder %s997_s6, %s1118_s4 }
 0x22b   :  { %p1003_p3 = pnand %p1001_p2, %p998_p1 }
 0x22d   :  { %1006 = shalt.err (!%p1003_p3)
}
 0x22e   :  { %680 = dma.vmem_to_hbm [thread:$0]  %s675_s26, 1024, %s1118_s4, [#allocation5], %s1015_s27, %s1015_s27, %s1016_s28  }
 0x22f   :  { %1011 = dma.done.wait [#allocation5], 1024  }
 0x230   :  { %1012 = vsyncadd [#allocation5], 4294966272 }
 0x231   :  { %684 = vsyncpa [#allocation4], 1 }
 0x232   :  { %685 = vsyncpa [#allocation7], 1 }
 0x233   :  { %686 = vsyncpa [#allocation5], 1 }

</bundles_post_ra>
